<compile_context>
chip_gen: v5e
topology: v5e:2x2
jax: 0.10.0
libtpu: 0.0.40
codegen_flags: <defaults>
</compile_context>

<pallas_src>
import functools

import jax
import jax.numpy as jnp
from jax.experimental import pallas as pl
from jax.experimental.pallas import tpu as pltpu


# ----------------------------------------------------------------------------
# Kernels
# ----------------------------------------------------------------------------
def _cls_linear_kernel(p_ref, w_ref, b_ref, o_ref):
    """pooled [TB, H] @ weight [H, Lp] + bias [1, Lp] -> logits [TB, Lp]."""
    pooled = p_ref[...].astype(jnp.float32)
    logits = jnp.dot(pooled, w_ref[...], preferred_element_type=jnp.float32)
    logits = logits + b_ref[...]
    o_ref[...] = logits.astype(o_ref.dtype)


def _make_pooling_kernel(pooling_strategy, has_mask, inv_seq_len):
    """Fused (mean|max) pooling over a tiled seq axis + linear classifier."""

    def kernel(*refs):
        if has_mask:
            h_ref, m_ref, w_ref, b_ref, o_ref = refs[:5]
            scratch = refs[5:]
        else:
            h_ref, w_ref, b_ref, o_ref = refs[:4]
            scratch = refs[4:]
        acc_ref = scratch[0]
        den_ref = scratch[1] if len(scratch) > 1 else None

        k = pl.program_id(1)
        nk = pl.num_programs(1)

        @pl.when(k == 0)
        def _init():
            if pooling_strategy == "max":
                acc_ref[...] = jnp.full(acc_ref.shape,
                                        jnp.finfo(jnp.float32).min,
                                        jnp.float32)
            else:
                acc_ref[...] = jnp.zeros(acc_ref.shape, jnp.float32)
            if den_ref is not None:
                den_ref[...] = jnp.zeros(den_ref.shape, jnp.float32)

        # Load native-dtype tile, compute in f32 (v5e-safe).
        h = h_ref[...].astype(jnp.float32)                 # [TB, TS, H]
        if has_mask:
            m = m_ref[...].astype(jnp.float32)             # [TB, TS, 1]

        if pooling_strategy == "mean":
            if has_mask:
                acc_ref[...] += jnp.sum(h * m, axis=1)     # [TB, H]
                den_ref[...] += jnp.sum(m, axis=1)         # [TB, 1]
            else:
                acc_ref[...] += jnp.sum(h, axis=1)
        else:  # max
            if has_mask:
                # Match the torch module's -1e9 masked_fill sentinel.
                h = jnp.where(m > 0.0, h, jnp.float32(-1e9))
            acc_ref[...] = jnp.maximum(acc_ref[...], jnp.max(h, axis=1))

        @pl.when(k == nk - 1)
        def _finalize():
            pooled = acc_ref[...]
            if pooling_strategy == "mean":
                if has_mask:
                    denom = jnp.maximum(den_ref[...], 1e-9)
                    pooled = pooled * pl.reciprocal(denom, approx=True)
                else:
                    pooled = pooled * inv_seq_len
            # Dropout == identity in eval mode.
            logits = jnp.dot(pooled, w_ref[...],
                             preferred_element_type=jnp.float32)
            logits = logits + b_ref[...]
            o_ref[...] = logits.astype(o_ref.dtype)

    return kernel


# ----------------------------------------------------------------------------
# Wrapper
# ----------------------------------------------------------------------------
@functools.partial(jax.jit, static_argnames=("pooling_strategy", "use_mask"))
def sequence_classification_head(hidden_states, attention_mask, weight, bias,
                                 pooling_strategy="cls", use_mask=True):
    """
    hidden_states : [B, S, H] f32 or bf16
    attention_mask: [B, S]    float (ignored when use_mask=False or cls)
    weight        : [H, L]    f32   (transpose of torch Linear weight)
    bias          : [L]       f32
    returns logits: [B, L]    f32
    """
    B, S, H = hidden_states.shape
    L = bias.shape[0]

    # ---- lane-dense classifier: pad labels up to a multiple of 128 ----------
    LANE = 128
    L_pad = ((L + LANE - 1) // LANE) * LANE
    w_p = weight.astype(jnp.float32)
    b_p = bias.astype(jnp.float32)
    if L_pad != L:
        w_p = jnp.pad(w_p, ((0, 0), (0, L_pad - L)))
        b_p = jnp.pad(b_p, (0, L_pad - L))
    b2d = b_p.reshape(1, L_pad)

    # ---- batch tiling: TB=8 keeps sublanes full; B//TB>=2 feeds both v7x TCs
    TB = 8
    B_pad = ((B + TB - 1) // TB) * TB

    # weight/bias resident in VMEM across the whole grid (constant index_map).
    w_spec = pl.BlockSpec((H, L_pad), lambda *_: (0, 0))
    b_spec = pl.BlockSpec((1, L_pad), lambda *_: (0, 0))

    # ------------------------------ CLS path --------------------------------
    if pooling_strategy == "cls":
        pooled = hidden_states[:, 0, :]                       # read only row 0
        if B_pad != B:
            pooled = jnp.pad(pooled, ((0, B_pad - B), (0, 0)))
        out = pl.pallas_call(
            _cls_linear_kernel,
            out_shape=jax.ShapeDtypeStruct((B_pad, L_pad), jnp.float32),
            grid_spec=pltpu.PrefetchScalarGridSpec(
                num_scalar_prefetch=0,
                grid=(B_pad // TB,),
                in_specs=[pl.BlockSpec((TB, H), lambda i: (i, 0)),
                          w_spec, b_spec],
                out_specs=pl.BlockSpec((TB, L_pad), lambda i: (i, 0))),
            compiler_params=pltpu.CompilerParams(
                dimension_semantics=("parallel",)),
        )(pooled, w_p, b2d)
        return out[:B, :L]

    if pooling_strategy not in ("mean", "max"):
        raise ValueError(f"unsupported pooling strategy: {pooling_strategy}")

    # --------------------------- MEAN / MAX path ----------------------------
    has_mask = bool(use_mask)

    # Seq tile: keep each pipelined hidden buffer around <= 4 MiB.
    itemsize = jnp.dtype(hidden_states.dtype).itemsize
    budget = 4 * 1024 * 1024
    ts = budget // max(1, TB * H * itemsize)
    ts = max(8, min(512, (ts // 8) * 8))
    S8 = ((S + 7) // 8) * 8
    TS = min(ts, S8)
    S_pad = ((S + TS - 1) // TS) * TS

    pad_b, pad_s = B_pad - B, S_pad - S
    h = hidden_states
    if pad_b or pad_s:
        if pooling_strategy == "max" and not has_mask:
            pad_val = jnp.finfo(h.dtype).min   # never wins an unmasked max
        else:
            pad_val = 0                        # neutral for sum / masked paths
        h = jnp.pad(h, ((0, pad_b), (0, pad_s), (0, 0)),
                    constant_values=pad_val)

    in_specs = [pl.BlockSpec((TB, TS, H), lambda i, k: (i, k, 0))]
    args = [h]
    if has_mask:
        m = attention_mask.astype(jnp.float32)
        if pad_b or pad_s:
            m = jnp.pad(m, ((0, pad_b), (0, pad_s)))   # pad tokens masked off
        m = m.reshape(B_pad, S_pad, 1)
        in_specs.append(pl.BlockSpec((TB, TS, 1), lambda i, k: (i, k, 0)))
        args.append(m)
    in_specs += [w_spec, b_spec]
    args += [w_p, b2d]

    scratch_shapes = [pltpu.VMEM((TB, H), jnp.float32)]          # pooled acc
    if pooling_strategy == "mean" and has_mask:
        scratch_shapes.append(pltpu.VMEM((TB, 1), jnp.float32))  # mask-sum acc

    kernel = _make_pooling_kernel(pooling_strategy, has_mask, 1.0 / S)

    out = pl.pallas_call(
        kernel,
        out_shape=jax.ShapeDtypeStruct((B_pad, L_pad), jnp.float32),
        grid_spec=pltpu.PrefetchScalarGridSpec(
            num_scalar_prefetch=0,
            grid=(B_pad // TB, S_pad // TS),
            in_specs=in_specs,
            out_specs=pl.BlockSpec((TB, L_pad), lambda i, k: (i, 0)),
            scratch_shapes=scratch_shapes),
        compiler_params=pltpu.CompilerParams(
            dimension_semantics=("parallel", "arbitrary")),
    )(*args)
    return out[:B, :L]


# ----------------------------------------------------------------------------
# Pure-JAX reference
# ----------------------------------------------------------------------------
def _reference(hidden_states, attention_mask, weight, bias, pooling_strategy,
               use_mask):
    h = hidden_states
    if pooling_strategy == "cls":
        pooled = h[:, 0]
    elif pooling_strategy == "mean":
        if use_mask:
            m = attention_mask[:, :, None]
            pooled = (h * m).sum(1) / jnp.maximum(m.sum(1), 1e-9)
        else:
            pooled = h.mean(1)
    else:  # max
        if use_mask:
            m = attention_mask[:, :, None]
            pooled = jnp.where(m > 0, h, -1e9).max(1)
        else:
            pooled = h.max(1)
    return pooled @ weight + bias


if __name__ == "__main__":
    # Small shapes consistent with the module's forward:
    #   hidden_states [batch=2, seq=8, hidden=32], num_labels=4.
    B, S, H, L = 2, 8, 32, 4

    key = jax.random.PRNGKey(0)
    k_h, k_w = jax.random.split(key, 2)

    hidden_states = jax.random.normal(k_h, (B, S, H), dtype=jnp.float32)

    # Deterministic parameter init matching nn.init.normal_(std=0.02)/zeros_.
    weight = 0.02 * jax.random.normal(k_w, (H, L), dtype=jnp.float32)  # [H, L]
    bias = jnp.zeros((L,), dtype=jnp.float32)

    # Attention mask: first batch fully valid, second batch has padding.
    attention_mask = jnp.stack(
        [jnp.ones((S,), jnp.float32),
         jnp.concatenate([jnp.ones((5,), jnp.float32),
                          jnp.zeros((S - 5,), jnp.float32)])],
        axis=0,
    )  # [B, S]

    ok = True
    for strategy in ("cls", "mean", "max"):
        for use_mask in (True, False):
            out = sequence_classification_head(
                hidden_states, attention_mask, weight, bias,
                pooling_strategy=strategy, use_mask=use_mask)
            out = jax.block_until_ready(out)
            ref = _reference(hidden_states, attention_mask, weight, bias,
                             strategy, use_mask)
            # Looser tolerance for masked mean: pl.reciprocal(approx=True).
            tol = 2e-2 if (strategy == "mean" and use_mask) else 1e-5
            if not jnp.allclose(out, ref, atol=tol, rtol=tol):
                ok = False
                err = float(jnp.max(jnp.abs(out - ref)))
                print(f"MISMATCH strategy={strategy} use_mask={use_mask} "
                      f"max_err={err}")

    if ok:
        print("KERNEL_OK")
</pallas_src>

<mosaic_0001>
module attributes {stable_mosaic.version = 11 : i64} {
  func.func @_cls_linear_kernel(%arg0: i32, %arg1: memref<8x32xf32, #tpu.memory_space<vmem>>, %arg2: memref<32x128xf32, #tpu.memory_space<vmem>>, %arg3: memref<1x128xf32, #tpu.memory_space<vmem>>, %arg4: memref<8x128xf32, #tpu.memory_space<vmem>>) attributes {dimension_semantics = [#tpu.dimension_semantics<parallel>], iteration_bounds = array<i64: 1>, scalar_prefetch = 0 : i64, scratch_operands = 0 : i64, tpu.core_type = #tpu.core_type<tc>, window_params = [{transform_indices = @transform_0, window_bounds = array<i64: 8, 32>}, {pipeline_mode = #tpu.pipeline_mode<synchronous>, transform_indices = @transform_1, window_bounds = array<i64: 32, 128>}, {pipeline_mode = #tpu.pipeline_mode<synchronous>, transform_indices = @transform_2, window_bounds = array<i64: 1, 128>}, {transform_indices = @transform_3, window_bounds = array<i64: 8, 128>}]} {
    %c0 = arith.constant 0 : index
    %c0_0 = arith.constant 0 : index
    %0 = vector.load %arg1[%c0, %c0_0] : memref<8x32xf32, #tpu.memory_space<vmem>>, vector<8x32xf32>
    %c0_1 = arith.constant 0 : index
    %c0_2 = arith.constant 0 : index
    %1 = vector.load %arg2[%c0_1, %c0_2] : memref<32x128xf32, #tpu.memory_space<vmem>>, vector<32x128xf32>
    %cst = arith.constant dense<0.000000e+00> : vector<8x128xf32>
    %2 = tpu.matmul %0, %1, %cst {dimension_numbers = #tpu.dot_dimension_numbers<[1], [0], [0], [1], [0, 0, 1, 1], [], []>} : vector<8x32xf32>, vector<32x128xf32>, vector<8x128xf32> -> vector<8x128xf32>
    %c0_3 = arith.constant 0 : index
    %c0_4 = arith.constant 0 : index
    %3 = vector.load %arg3[%c0_3, %c0_4] : memref<1x128xf32, #tpu.memory_space<vmem>>, vector<1x128xf32>
    %4 = vector.broadcast %3 : vector<1x128xf32> to vector<8x128xf32>
    %5 = arith.addf %2, %4 : vector<8x128xf32>
    %c0_5 = arith.constant 0 : index
    %c0_6 = arith.constant 0 : index
    %6 = vector.load %arg4[%c0_5, %c0_6] : memref<8x128xf32, #tpu.memory_space<vmem>>, vector<8x128xf32>
    tpu.vector_store %arg4[%c0_5, %c0_6], %5 {strides = array<i32>} : memref<8x128xf32, #tpu.memory_space<vmem>>, vector<8x128xf32>,
    return
  }
  func.func @transform_0(%arg0: i32) -> (i32, i32) {
    %c0_i32 = arith.constant 0 : i32
    %c0_i32_0 = arith.constant 0 : i32
    return %arg0, %c0_i32 : i32, i32
  }
  func.func @transform_1(%arg0: i32) -> (i32, i32) {
    %c0_i32 = arith.constant 0 : i32
    %c0_i32_0 = arith.constant 0 : i32
    %c0_i32_1 = arith.constant 0 : i32
    return %c0_i32, %c0_i32_0 : i32, i32
  }
  func.func @transform_2(%arg0: i32) -> (i32, i32) {
    %c0_i32 = arith.constant 0 : i32
    %c0_i32_0 = arith.constant 0 : i32
    %c0_i32_1 = arith.constant 0 : i32
    return %c0_i32, %c0_i32_0 : i32, i32
  }
  func.func @transform_3(%arg0: i32) -> (i32, i32) {
    %c0_i32 = arith.constant 0 : i32
    %c0_i32_0 = arith.constant 0 : i32
    return %arg0, %c0_i32 : i32, i32
  }
}

</mosaic_0001>

<bundles_post_ra>
// kernel: sequence_classification_head.1
= control target key start
LH: loop header
LB: loop body
LE: loop exit
PB: predicated region body
PF: predicated region fallthrough
CT: control target
= control target key end

     0   :  { %vm23_vm0 = vcmask 261120   ;;  %s95_s1 = inlined_call_operand.vmem [shape: f32[32,128], index: 1, kind: input, shape index: {}]   ;;  %s96_s2 = inlined_call_operand.vmem [shape: f32[1,128], index: 2, kind: input, shape index: {}]   ;;  %s97_s0 = inlined_call_operand.vmem [shape: f32[8,32], index: 0, kind: input, shape index: {}]   ;;  %s98_s3 = inlined_call_operand.vmem [shape: f32[8,128], index: 3, kind: output, shape index: {}]  }
   0x1   :  { %v18_v0 = vld [vmem:[%s95_s1 + $0x18] sm:$0xff]  ;;  %v17_v1 = vld [vmem:[%s95_s1 + $0x10] sm:$0xff]  ;;  %v16_v2 = vld [vmem:[%s95_s1 + $0x8] sm:$0xff] }
   0x2   :  { %39 = vmatpush.msra.mxu0 %v18_v0  ;;  %v15_v3 = vld [vmem:[%s95_s1] sm:$0xff] }
   0x3   :  { %v14_v4 = vld [vmem:[%s97_s0] sm:$0xff] }
   0x4   :  { %40 = vmatpush.msra.mxu0 %v17_v1  ;;  %v53_v5 = vld [vmem:[%s96_s2] ss:$0 sm:$0xff] }
   0x6   :  { %41 = vmatpush.msra.mxu0 %v16_v2 }
   0x8   :  { %42 = vmatpush.msra.mxu0 %v15_v3 }
   0x9   :  { %52 = vmatmul.msk.f32.vlgmr.msra.gmra.mxu0 %vm23_vm0, %v14_v4 }
  0x86   :  { %v44_v6 = vpop.f32.mrf.mxu0 }
  0x87   :  { %v45_v7 = vadd.f32 %v53_v5, %v44_v6 }
  0x89   :  { %47 = vst [vmem:[%s98_s3] sm:$0xff] %v45_v7 }

</bundles_post_ra>
